<compile_context>
chip_gen: v7x
topology: tpu7x:2x2x1
jax: 0.10.0
libtpu: 0.0.40
codegen_flags: <defaults>
</compile_context>

<pallas_src>
import functools

import jax
import jax.numpy as jnp
from jax.experimental import pallas as pl
from jax.experimental.pallas import tpu as pltpu


def _round_up(n, m):
    return ((n + m - 1) // m) * m


def _elu(x):
    # ELU(alpha=1): x if x > 0 else exp(x) - 1 (clamped so the unselected
    # lane never overflows).
    return jnp.where(x > 0, x, jnp.exp(jnp.minimum(x, 0.0)) - 1.0)


# ----------------------------- Pallas kernel ------------------------------ #
def cvae_kernel(
    input_size,                       # static: width of x inside xc
    xc_ref, eps_ref,                  # row-tiled inputs
    w1_ref, b1_ref,                   # encoder Linear (acts on cat([x, c]))
    w2_ref, b2_ref,                   # fused fc21|fc22 -> [mu | logvar]
    w3z_ref, w3c_ref, b3_ref,         # decoder Linear 1 (split over concat dim)
    w4_ref, b4_ref,                   # decoder Linear 2
    recon_ref, mlv_ref,               # outputs (recon, packed [mu | logvar])
):
    xc = xc_ref[...]                  # (tm, input+cond) f32
    c = xc[:, input_size:]            # static, 128-lane-aligned slice

    # ---- encode: Linear(cat([x, c])) + ELU ----
    h = (
        jnp.dot(xc.astype(jnp.bfloat16), w1_ref[...],
                preferred_element_type=jnp.float32)
        + b1_ref[...]
    )
    h = _elu(h)

    # ---- fused fc21/fc22: one MXU push, packed [mu | logvar] ----
    mlv = (
        jnp.dot(h.astype(jnp.bfloat16), w2_ref[...],
                preferred_element_type=jnp.float32)
        + b2_ref[...]
    )
    latent = mlv.shape[-1] // 2
    mu = mlv[:, :latent]
    logvar = mlv[:, latent:]

    # ---- reparameterize (f32 elementwise) ----
    std = jnp.exp(0.5 * logvar)
    z = eps_ref[...] * std + mu

    # ---- decode: Linear(cat([z, c])) + ELU, Linear, Sigmoid ----
    h2 = (
        jnp.dot(z.astype(jnp.bfloat16), w3z_ref[...],
                preferred_element_type=jnp.float32)
        + jnp.dot(c.astype(jnp.bfloat16), w3c_ref[...],
                  preferred_element_type=jnp.float32)
        + b3_ref[...]
    )
    h2 = _elu(h2)
    logits = (
        jnp.dot(h2.astype(jnp.bfloat16), w4_ref[...],
                preferred_element_type=jnp.float32)
        + b4_ref[...]
    )
    # sigmoid = 1 / (1 + exp(-x)); exp and approx reciprocal both go to EUP.
    recon_ref[...] = pl.reciprocal(1.0 + jnp.exp(-logits), approx=True)
    mlv_ref[...] = mlv


# ------------------------------- Wrapper ----------------------------------- #
@functools.partial(jax.jit, static_argnames=("block_b",))
def simple_cvae_forward(x, c, params, eps, *, block_b=256):
    """x, c: (B, W, H) float32. Returns (recon, mu, logvar) like the PyTorch module."""
    B = x.shape[0]
    x_flat = x.reshape(B, -1).astype(jnp.float32)
    c_flat = c.reshape(B, -1).astype(jnp.float32)
    input_size = x_flat.shape[1]
    cond_size = c_flat.shape[1]
    latent = eps.shape[1]
    lin1 = params["w1"].shape[1]
    lin2 = params["w4"].shape[0]

    # torch.cat([x, c], 1) once in glue; decoder's c is sliced in-kernel.
    xc = jnp.concatenate([x_flat, c_flat], axis=1)

    # Batch tile: multiple of 8 sublanes, pipelined over a 1-D grid.
    tm = min(block_b, _round_up(B, 8))
    Bp = _round_up(B, tm)
    if Bp != B:
        xc = jnp.pad(xc, ((0, Bp - B), (0, 0)))
        eps = jnp.pad(eps, ((0, Bp - B), (0, 0)))
    grid = (Bp // tm,)

    # Weights in bf16 for the MXU (f32 accumulation); biases stay f32.
    bf16 = lambda w: w.astype(jnp.bfloat16)
    w1, b1 = bf16(params["w1"]), params["b1"]
    w2, b2 = bf16(params["w2"]), params["b2"]
    w3z, w3c, b3 = bf16(params["w3z"]), bf16(params["w3c"]), params["b3"]
    w4, b4 = bf16(params["w4"]), params["b4"]

    row = lambda d: pl.BlockSpec((tm, d), lambda i: (i, 0))
    resident = lambda a: pl.BlockSpec(a.shape, lambda i, _nd=a.ndim: (0,) * _nd)

    out_shapes = (
        jax.ShapeDtypeStruct((Bp, input_size), jnp.float32),   # recon
        jax.ShapeDtypeStruct((Bp, 2 * latent), jnp.float32),   # [mu | logvar]
    )

    flops = 2 * Bp * ((input_size + cond_size) * lin1 + lin1 * 2 * latent
                      + (latent + cond_size) * lin2 + lin2 * input_size)
    transcendentals = Bp * (lin1 + latent + lin2 + 2 * input_size)
    bytes_accessed = (
        4 * Bp * (input_size + cond_size + latent)              # inputs
        + 4 * Bp * (input_size + 2 * latent)                    # outputs
        + 2 * (w1.size + w2.size + w3z.size + w3c.size + w4.size)
        + 4 * (b1.size + b2.size + b3.size + b4.size)
    )

    recon, mlv = pl.pallas_call(
        functools.partial(cvae_kernel, input_size),
        out_shape=out_shapes,
        grid=grid,
        in_specs=[
            row(input_size + cond_size),   # xc
            row(latent),                   # eps
            resident(w1), resident(b1),
            resident(w2), resident(b2),
            resident(w3z), resident(w3c), resident(b3),
            resident(w4), resident(b4),
        ],
        out_specs=(row(input_size), row(2 * latent)),
        compiler_params=pltpu.CompilerParams(
            dimension_semantics=("parallel",),
            vmem_limit_bytes=32 * 1024 * 1024,
        ),
        cost_estimate=pl.CostEstimate(
            flops=int(flops),
            transcendentals=int(transcendentals),
            bytes_accessed=int(bytes_accessed),
        ),
    )(xc, eps, w1, b1, w2, b2, w3z, w3c, b3, w4, b4)

    recon = recon[:B]
    mu = mlv[:B, :latent]
    logvar = mlv[:B, latent:]
    return recon, mu, logvar


def init_params(key, input_size, condition_size, latent_size, lin1_size, lin2_size):
    """PyTorch nn.Linear default init (U(-1/sqrt(fan_in), +1/sqrt(fan_in)))."""
    def linear(key, fan_in, fan_out):
        kw, kb = jax.random.split(key)
        bound = 1.0 / float(fan_in) ** 0.5
        w = jax.random.uniform(kw, (fan_in, fan_out), jnp.float32, -bound, bound)
        b = jax.random.uniform(kb, (1, fan_out), jnp.float32, -bound, bound)
        return w, b

    k1, k2, k3, k4, k5 = jax.random.split(key, 5)
    w1, b1 = linear(k1, input_size + condition_size, lin1_size)
    w21, b21 = linear(k2, lin1_size, latent_size)
    w22, b22 = linear(k3, lin1_size, latent_size)
    w3, b3 = linear(k4, latent_size + condition_size, lin2_size)
    w4, b4 = linear(k5, lin2_size, input_size)

    return {
        "w1": w1, "b1": b1,
        # fc21 | fc22 fused along the output dim: one MXU push in-kernel.
        "w2": jnp.concatenate([w21, w22], axis=1),
        "b2": jnp.concatenate([b21, b22], axis=1),
        # decoder Linear(cat([z, c])) split over the concat dim (no in-kernel cat).
        "w3z": w3[:latent_size], "w3c": w3[latent_size:], "b3": b3,
        "w4": w4, "b4": b4,
    }


def _reference_forward(x, c, params, eps):
    """Pure-JAX f32 reference mirroring the PyTorch module."""
    B = x.shape[0]
    xf = x.reshape(B, -1)
    cf = c.reshape(B, -1)
    latent = eps.shape[1]

    def elu(v):
        return jnp.where(v > 0, v, jnp.exp(jnp.minimum(v, 0.0)) - 1.0)

    h = elu(jnp.concatenate([xf, cf], 1) @ params["w1"] + params["b1"])
    mlv = h @ params["w2"] + params["b2"]
    mu, logvar = mlv[:, :latent], mlv[:, latent:]
    z = eps * jnp.exp(0.5 * logvar) + mu
    h2 = elu(z @ params["w3z"] + cf @ params["w3c"] + params["b3"])
    recon = jax.nn.sigmoid(h2 @ params["w4"] + params["b4"])
    return recon, mu, logvar


if __name__ == "__main__":
    # Small shapes consistent with the forward pass: x, c are (B, W, H).
    B, W, H = 8, 16, 16
    input_size = W * H          # 256
    condition_size = W * H      # 256
    latent_size = 8
    lin1_size = 128
    lin2_size = 128

    key = jax.random.PRNGKey(0)
    kx, kc, kp, ke = jax.random.split(key, 4)
    x = jax.random.normal(kx, (B, W, H), jnp.float32)
    c = jax.random.normal(kc, (B, W, H), jnp.float32)
    params = init_params(kp, input_size, condition_size, latent_size,
                         lin1_size, lin2_size)
    # TODO(synk): torch.randn_like(std) is stateful; noise is passed as a
    # deterministic input here instead of drawn inside the kernel.
    eps = jax.random.normal(ke, (B, latent_size), jnp.float32)

    recon, mu, logvar = simple_cvae_forward(x, c, params, eps)
    jax.block_until_ready((recon, mu, logvar))

    assert recon.shape == (B, input_size)
    assert mu.shape == (B, latent_size)
    assert logvar.shape == (B, latent_size)

    # Sanity check against the pure-JAX f32 reference (bf16 matmul tolerance).
    r_ref, mu_ref, lv_ref = _reference_forward(x, c, params, eps)
    assert float(jnp.max(jnp.abs(recon - r_ref))) < 0.1
    assert float(jnp.max(jnp.abs(mu - mu_ref))) < 0.1
    assert float(jnp.max(jnp.abs(logvar - lv_ref))) < 0.1
    assert bool(jnp.all(jnp.isfinite(recon)))

    print("KERNEL_OK")
</pallas_src>

<mosaic_0001>
module attributes {stable_mosaic.version = 11 : i64} {
  func.func @cvae_kernel(%arg0: i32, %arg1: memref<8x512xf32, #tpu.memory_space<vmem>>, %arg2: memref<8x8xf32, #tpu.memory_space<vmem>>, %arg3: memref<512x128xbf16, #tpu.memory_space<vmem>>, %arg4: memref<1x128xf32, #tpu.memory_space<vmem>>, %arg5: memref<128x16xbf16, #tpu.memory_space<vmem>>, %arg6: memref<1x16xf32, #tpu.memory_space<vmem>>, %arg7: memref<8x128xbf16, #tpu.memory_space<vmem>>, %arg8: memref<256x128xbf16, #tpu.memory_space<vmem>>, %arg9: memref<1x128xf32, #tpu.memory_space<vmem>>, %arg10: memref<128x256xbf16, #tpu.memory_space<vmem>>, %arg11: memref<1x256xf32, #tpu.memory_space<vmem>>, %arg12: memref<8x256xf32, #tpu.memory_space<vmem>>, %arg13: memref<8x16xf32, #tpu.memory_space<vmem>>) attributes {dimension_semantics = [#tpu.dimension_semantics<parallel>], iteration_bounds = array<i64: 1>, scalar_prefetch = 0 : i64, scratch_operands = 0 : i64, tpu.core_type = #tpu.core_type<tc>, window_params = [{transform_indices = @transform_0, window_bounds = array<i64: 8, 512>}, {transform_indices = @transform_1, window_bounds = array<i64: 8, 8>}, {pipeline_mode = #tpu.pipeline_mode<synchronous>, transform_indices = @transform_2, window_bounds = array<i64: 512, 128>}, {pipeline_mode = #tpu.pipeline_mode<synchronous>, transform_indices = @transform_3, window_bounds = array<i64: 1, 128>}, {pipeline_mode = #tpu.pipeline_mode<synchronous>, transform_indices = @transform_4, window_bounds = array<i64: 128, 16>}, {pipeline_mode = #tpu.pipeline_mode<synchronous>, transform_indices = @transform_5, window_bounds = array<i64: 1, 16>}, {pipeline_mode = #tpu.pipeline_mode<synchronous>, transform_indices = @transform_6, window_bounds = array<i64: 8, 128>}, {pipeline_mode = #tpu.pipeline_mode<synchronous>, transform_indices = @transform_7, window_bounds = array<i64: 256, 128>}, {pipeline_mode = #tpu.pipeline_mode<synchronous>, transform_indices = @transform_8, window_bounds = array<i64: 1, 128>}, {pipeline_mode = #tpu.pipeline_mode<synchronous>, transform_indices = @transform_9, window_bounds = array<i64: 128, 256>}, {pipeline_mode = #tpu.pipeline_mode<synchronous>, transform_indices = @transform_10, window_bounds = array<i64: 1, 256>}, {transform_indices = @transform_11, window_bounds = array<i64: 8, 256>}, {transform_indices = @transform_12, window_bounds = array<i64: 8, 16>}]} {
    %c0 = arith.constant 0 : index
    %c0_0 = arith.constant 0 : index
    %0 = vector.load %arg1[%c0, %c0_0] : memref<8x512xf32, #tpu.memory_space<vmem>>, vector<8x512xf32>
    %1 = vector.extract_strided_slice %0 {offsets = [0, 256], sizes = [8, 256], strides = [1, 1]} : vector<8x512xf32> to vector<8x256xf32>
    %2 = arith.truncf %0 : vector<8x512xf32> to vector<8x512xbf16>
    %c0_1 = arith.constant 0 : index
    %c0_2 = arith.constant 0 : index
    %3 = vector.load %arg3[%c0_1, %c0_2] : memref<512x128xbf16, #tpu.memory_space<vmem>>, vector<512x128xbf16>
    %cst = arith.constant dense<0.000000e+00> : vector<8x128xf32>
    %4 = tpu.matmul %2, %3, %cst {dimension_numbers = #tpu.dot_dimension_numbers<[1], [0], [0], [1], [0, 0, 1, 1], [], []>} : vector<8x512xbf16>, vector<512x128xbf16>, vector<8x128xf32> -> vector<8x128xf32>
    %c0_3 = arith.constant 0 : index
    %c0_4 = arith.constant 0 : index
    %5 = vector.load %arg4[%c0_3, %c0_4] : memref<1x128xf32, #tpu.memory_space<vmem>>, vector<1x128xf32>
    %6 = vector.broadcast %5 : vector<1x128xf32> to vector<8x128xf32>
    %7 = arith.addf %4, %6 : vector<8x128xf32>
    %cst_5 = arith.constant 0.000000e+00 : f32
    %8 = vector.broadcast %cst_5 : f32 to vector<8x128xf32>
    %9 = arith.cmpf ogt, %7, %8 : vector<8x128xf32>
    %cst_6 = arith.constant 0.000000e+00 : f32
    %10 = vector.broadcast %cst_6 : f32 to vector<8x128xf32>
    %11 = arith.minimumf %7, %10 : vector<8x128xf32>
    %12 = math.exp %11 : vector<8x128xf32>
    %cst_7 = arith.constant 1.000000e+00 : f32
    %13 = vector.broadcast %cst_7 : f32 to vector<8x128xf32>
    %14 = arith.subf %12, %13 : vector<8x128xf32>
    %15 = arith.select %9, %7, %14 : vector<8x128xi1>, vector<8x128xf32>
    %16 = arith.truncf %15 : vector<8x128xf32> to vector<8x128xbf16>
    %c0_8 = arith.constant 0 : index
    %c0_9 = arith.constant 0 : index
    %17 = vector.load %arg5[%c0_8, %c0_9] : memref<128x16xbf16, #tpu.memory_space<vmem>>, vector<128x16xbf16>
    %cst_10 = arith.constant dense<0.000000e+00> : vector<8x16xf32>
    %18 = tpu.matmul %16, %17, %cst_10 {dimension_numbers = #tpu.dot_dimension_numbers<[1], [0], [0], [1], [0, 0, 1, 1], [], []>} : vector<8x128xbf16>, vector<128x16xbf16>, vector<8x16xf32> -> vector<8x16xf32>
    %c0_11 = arith.constant 0 : index
    %c0_12 = arith.constant 0 : index
    %19 = vector.load %arg6[%c0_11, %c0_12] : memref<1x16xf32, #tpu.memory_space<vmem>>, vector<1x16xf32>
    %20 = vector.broadcast %19 : vector<1x16xf32> to vector<8x16xf32>
    %21 = arith.addf %18, %20 : vector<8x16xf32>
    %22 = vector.extract_strided_slice %21 {offsets = [0, 0], sizes = [8, 8], strides = [1, 1]} : vector<8x16xf32> to vector<8x8xf32>
    %23 = vector.extract_strided_slice %21 {offsets = [0, 8], sizes = [8, 8], strides = [1, 1]} : vector<8x16xf32> to vector<8x8xf32>
    %cst_13 = arith.constant 5.000000e-01 : f32
    %24 = vector.broadcast %cst_13 : f32 to vector<8x8xf32>
    %25 = arith.mulf %24, %23 : vector<8x8xf32>
    %26 = math.exp %25 : vector<8x8xf32>
    %c0_14 = arith.constant 0 : index
    %c0_15 = arith.constant 0 : index
    %27 = vector.load %arg2[%c0_14, %c0_15] : memref<8x8xf32, #tpu.memory_space<vmem>>, vector<8x8xf32>
    %28 = arith.mulf %27, %26 : vector<8x8xf32>
    %29 = arith.addf %28, %22 : vector<8x8xf32>
    %30 = arith.truncf %29 : vector<8x8xf32> to vector<8x8xbf16>
    %c0_16 = arith.constant 0 : index
    %c0_17 = arith.constant 0 : index
    %31 = vector.load %arg7[%c0_16, %c0_17] : memref<8x128xbf16, #tpu.memory_space<vmem>>, vector<8x128xbf16>
    %cst_18 = arith.constant dense<0.000000e+00> : vector<8x128xf32>
    %32 = tpu.matmul %30, %31, %cst_18 {dimension_numbers = #tpu.dot_dimension_numbers<[1], [0], [0], [1], [0, 0, 1, 1], [], []>} : vector<8x8xbf16>, vector<8x128xbf16>, vector<8x128xf32> -> vector<8x128xf32>
    %33 = arith.truncf %1 : vector<8x256xf32> to vector<8x256xbf16>
    %c0_19 = arith.constant 0 : index
    %c0_20 = arith.constant 0 : index
    %34 = vector.load %arg8[%c0_19, %c0_20] : memref<256x128xbf16, #tpu.memory_space<vmem>>, vector<256x128xbf16>
    %cst_21 = arith.constant dense<0.000000e+00> : vector<8x128xf32>
    %35 = tpu.matmul %33, %34, %cst_21 {dimension_numbers = #tpu.dot_dimension_numbers<[1], [0], [0], [1], [0, 0, 1, 1], [], []>} : vector<8x256xbf16>, vector<256x128xbf16>, vector<8x128xf32> -> vector<8x128xf32>
    %36 = arith.addf %32, %35 : vector<8x128xf32>
    %c0_22 = arith.constant 0 : index
    %c0_23 = arith.constant 0 : index
    %37 = vector.load %arg9[%c0_22, %c0_23] : memref<1x128xf32, #tpu.memory_space<vmem>>, vector<1x128xf32>
    %38 = vector.broadcast %37 : vector<1x128xf32> to vector<8x128xf32>
    %39 = arith.addf %36, %38 : vector<8x128xf32>
    %cst_24 = arith.constant 0.000000e+00 : f32
    %40 = vector.broadcast %cst_24 : f32 to vector<8x128xf32>
    %41 = arith.cmpf ogt, %39, %40 : vector<8x128xf32>
    %cst_25 = arith.constant 0.000000e+00 : f32
    %42 = vector.broadcast %cst_25 : f32 to vector<8x128xf32>
    %43 = arith.minimumf %39, %42 : vector<8x128xf32>
    %44 = math.exp %43 : vector<8x128xf32>
    %cst_26 = arith.constant 1.000000e+00 : f32
    %45 = vector.broadcast %cst_26 : f32 to vector<8x128xf32>
    %46 = arith.subf %44, %45 : vector<8x128xf32>
    %47 = arith.select %41, %39, %46 : vector<8x128xi1>, vector<8x128xf32>
    %48 = arith.truncf %47 : vector<8x128xf32> to vector<8x128xbf16>
    %c0_27 = arith.constant 0 : index
    %c0_28 = arith.constant 0 : index
    %49 = vector.load %arg10[%c0_27, %c0_28] : memref<128x256xbf16, #tpu.memory_space<vmem>>, vector<128x256xbf16>
    %cst_29 = arith.constant dense<0.000000e+00> : vector<8x256xf32>
    %50 = tpu.matmul %48, %49, %cst_29 {dimension_numbers = #tpu.dot_dimension_numbers<[1], [0], [0], [1], [0, 0, 1, 1], [], []>} : vector<8x128xbf16>, vector<128x256xbf16>, vector<8x256xf32> -> vector<8x256xf32>
    %c0_30 = arith.constant 0 : index
    %c0_31 = arith.constant 0 : index
    %51 = vector.load %arg11[%c0_30, %c0_31] : memref<1x256xf32, #tpu.memory_space<vmem>>, vector<1x256xf32>
    %52 = vector.broadcast %51 : vector<1x256xf32> to vector<8x256xf32>
    %53 = arith.addf %50, %52 : vector<8x256xf32>
    %cst_32 = arith.constant 0.000000e+00 : f32
    %54 = vector.broadcast %cst_32 : f32 to vector<8x256xf32>
    %55 = arith.subf %54, %53 : vector<8x256xf32>
    %56 = math.exp %55 : vector<8x256xf32>
    %cst_33 = arith.constant 1.000000e+00 : f32
    %57 = vector.broadcast %cst_33 : f32 to vector<8x256xf32>
    %58 = arith.addf %57, %56 : vector<8x256xf32>
    %59 = tpu.reciprocal %58 {approx = true} : vector<8x256xf32> -> vector<8x256xf32>
    %c0_34 = arith.constant 0 : index
    %c0_35 = arith.constant 0 : index
    %60 = vector.load %arg12[%c0_34, %c0_35] : memref<8x256xf32, #tpu.memory_space<vmem>>, vector<8x256xf32>
    tpu.vector_store %arg12[%c0_34, %c0_35], %59 {strides = array<i32>} : memref<8x256xf32, #tpu.memory_space<vmem>>, vector<8x256xf32>,
    %c0_36 = arith.constant 0 : index
    %c0_37 = arith.constant 0 : index
    %61 = vector.load %arg13[%c0_36, %c0_37] : memref<8x16xf32, #tpu.memory_space<vmem>>, vector<8x16xf32>
    tpu.vector_store %arg13[%c0_36, %c0_37], %21 {strides = array<i32>} : memref<8x16xf32, #tpu.memory_space<vmem>>, vector<8x16xf32>,
    return
  }
  func.func @transform_0(%arg0: i32) -> (i32, i32) {
    %c0_i32 = arith.constant 0 : i32
    %c0_i32_0 = arith.constant 0 : i32
    return %arg0, %c0_i32 : i32, i32
  }
  func.func @transform_1(%arg0: i32) -> (i32, i32) {
    %c0_i32 = arith.constant 0 : i32
    %c0_i32_0 = arith.constant 0 : i32
    return %arg0, %c0_i32 : i32, i32
  }
  func.func @transform_2(%arg0: i32) -> (i32, i32) {
    %c0_i32 = arith.constant 0 : i32
    %c0_i32_0 = arith.constant 0 : i32
    %c0_i32_1 = arith.constant 0 : i32
    return %c0_i32, %c0_i32_0 : i32, i32
  }
  func.func @transform_3(%arg0: i32) -> (i32, i32) {
    %c0_i32 = arith.constant 0 : i32
    %c0_i32_0 = arith.constant 0 : i32
    %c0_i32_1 = arith.constant 0 : i32
    return %c0_i32, %c0_i32_0 : i32, i32
  }
  func.func @transform_4(%arg0: i32) -> (i32, i32) {
    %c0_i32 = arith.constant 0 : i32
    %c0_i32_0 = arith.constant 0 : i32
    %c0_i32_1 = arith.constant 0 : i32
    return %c0_i32, %c0_i32_0 : i32, i32
  }
  func.func @transform_5(%arg0: i32) -> (i32, i32) {
    %c0_i32 = arith.constant 0 : i32
    %c0_i32_0 = arith.constant 0 : i32
    %c0_i32_1 = arith.constant 0 : i32
    return %c0_i32, %c0_i32_0 : i32, i32
  }
  func.func @transform_6(%arg0: i32) -> (i32, i32) {
    %c0_i32 = arith.constant 0 : i32
    %c0_i32_0 = arith.constant 0 : i32
    %c0_i32_1 = arith.constant 0 : i32
    return %c0_i32, %c0_i32_0 : i32, i32
  }
  func.func @transform_7(%arg0: i32) -> (i32, i32) {
    %c0_i32 = arith.constant 0 : i32
    %c0_i32_0 = arith.constant 0 : i32
    %c0_i32_1 = arith.constant 0 : i32
    return %c0_i32, %c0_i32_0 : i32, i32
  }
  func.func @transform_8(%arg0: i32) -> (i32, i32) {
    %c0_i32 = arith.constant 0 : i32
    %c0_i32_0 = arith.constant 0 : i32
    %c0_i32_1 = arith.constant 0 : i32
    return %c0_i32, %c0_i32_0 : i32, i32
  }
  func.func @transform_9(%arg0: i32) -> (i32, i32) {
    %c0_i32 = arith.constant 0 : i32
    %c0_i32_0 = arith.constant 0 : i32
    %c0_i32_1 = arith.constant 0 : i32
    return %c0_i32, %c0_i32_0 : i32, i32
  }
  func.func @transform_10(%arg0: i32) -> (i32, i32) {
    %c0_i32 = arith.constant 0 : i32
    %c0_i32_0 = arith.constant 0 : i32
    %c0_i32_1 = arith.constant 0 : i32
    return %c0_i32, %c0_i32_0 : i32, i32
  }
  func.func @transform_11(%arg0: i32) -> (i32, i32) {
    %c0_i32 = arith.constant 0 : i32
    %c0_i32_0 = arith.constant 0 : i32
    return %arg0, %c0_i32 : i32, i32
  }
  func.func @transform_12(%arg0: i32) -> (i32, i32) {
    %c0_i32 = arith.constant 0 : i32
    %c0_i32_0 = arith.constant 0 : i32
    return %arg0, %c0_i32 : i32, i32
  }
}

</mosaic_0001>

<bundles_post_ra>
// kernel: simple_cvae_forward.1
= control target key start
LH: loop header
LB: loop body
LE: loop exit
PB: predicated region body
PF: predicated region fallthrough
CT: control target
= control target key end

     0   :  { %v1239_v39 = vmov 0.0   ;;  %s1576_s0 = inlined_call_operand.vmem [shape: f32[8,512], index: 0, kind: input, shape index: {}]   ;;  %s1577_s1 = inlined_call_operand.vmem [shape: f32[8,8], index: 1, kind: input, shape index: {}]   ;;  %s1578_s2 = inlined_call_operand.vmem [shape: bf16[512,128], index: 2, kind: input, shape index: {}]   ;;  %s1579_s3 = inlined_call_operand.vmem [shape: f32[1,128], index: 3, kind: input, shape index: {}]   ;;  %s1580_s4 = inlined_call_operand.vmem [shape: bf16[128,16], index: 4, kind: input, shape index: {}]   ;;  %s1581_s5 = inlined_call_operand.vmem [shape: f32[1,16], index: 5, kind: input, shape index: {}]   ;;  %s1582_s6 = inlined_call_operand.vmem [shape: bf16[8,128], index: 6, kind: input, shape index: {}]   ;;  %s1583_s7 = inlined_call_operand.vmem [shape: bf16[256,128], index: 7, kind: input, shape index: {}]   ;;  %s1584_s8 = inlined_call_operand.vmem [shape: f32[1,128], index: 8, kind: input, shape index: {}]   ;;  %s1585_s9 = inlined_call_operand.vmem [shape: bf16[128,256], index: 9, kind: input, shape index: {}]   ;;  %s1586_s10 = inlined_call_operand.vmem [shape: f32[1,256], index: 10, kind: input, shape index: {}]   ;;  %s1587_s11 = inlined_call_operand.hbm [shape: f32[8,256], index: 11, kind: output, shape index: {0}]   ;;  %s1588_s12 = inlined_call_operand.vmem [shape: f32[8,16], index: 12, kind: output, shape index: {1}]  }
   0x1   :  { %v1121_v0 = vld [vmem:[%s1578_s2 + $0x40] sm:$0xff]   ;;  %v1125_v4 = vld [vmem:[%s1578_s2 + $0x48] sm:$0xff]   ;;  %v1129_v8 = vld [vmem:[%s1578_s2 + $0x50] sm:$0xff]  }
   0x2   :  { %v1122_v1 = vld [vmem:[%s1578_s2 + $0xc0] sm:$0xff]   ;;  %1013 = vmatprep.subr.bf16.mxu0 %v1121_v0  ;;  %v1126_v5 = vld [vmem:[%s1578_s2 + $0xc8] sm:$0xff]   ;;  %v1130_v9 = vld [vmem:[%s1578_s2 + $0xd0] sm:$0xff]  }
   0x3   :  { %v1123_v2 = vld [vmem:[%s1578_s2] sm:$0xff]   ;;  %1035 = vmatprep.subr.bf16.mxu1 %v1122_v1  ;;  %v1127_v6 = vld [vmem:[%s1578_s2 + $0x8] sm:$0xff]   ;;  %v1131_v10 = vld [vmem:[%s1578_s2 + $0x10] sm:$0xff]  }
   0x4   :  { %v1124_v3 = vld [vmem:[%s1578_s2 + $0x80] sm:$0xff]   ;;  %1014 = vmatpush3.bf16.msra.mxu0 %v1123_v2  ;;  %v1128_v7 = vld [vmem:[%s1578_s2 + $0x88] sm:$0xff]   ;;  %v1132_v11 = vld [vmem:[%s1578_s2 + $0x90] sm:$0xff]  }
   0x5   :  { %1036 = vmatpush3.bf16.msra.mxu1 %v1124_v3  ;;  %1015 = vmatprep.subr.bf16.mxu0 %v1125_v4  ;;  %v1133_v12 = vld [vmem:[%s1578_s2 + $0x58] sm:$0xff]   ;;  %v1137_v16 = vld [vmem:[%s1578_s2 + $0x60] sm:$0xff]   ;;  %v1141_v20 = vld [vmem:[%s1578_s2 + $0x68] sm:$0xff]  }
   0x6   :  { %1037 = vmatprep.subr.bf16.mxu1 %v1126_v5  ;;  %v1134_v13 = vld [vmem:[%s1578_s2 + $0xd8] sm:$0xff]   ;;  %v1138_v17 = vld [vmem:[%s1578_s2 + $0xe0] sm:$0xff]   ;;  %v1142_v21 = vld [vmem:[%s1578_s2 + $0xe8] sm:$0xff]  }
   0x7   :  { %v1135_v14 = vld [vmem:[%s1578_s2 + $0x18] sm:$0xff]   ;;  %v1139_v18 = vld [vmem:[%s1578_s2 + $0x20] sm:$0xff]   ;;  %v1143_v22 = vld [vmem:[%s1578_s2 + $0x28] sm:$0xff]  }
   0x8   :  { %1016 = vmatpush3.bf16.msra.mxu0 %v1127_v6  ;;  %v1136_v15 = vld [vmem:[%s1578_s2 + $0x98] sm:$0xff]   ;;  %v1140_v19 = vld [vmem:[%s1578_s2 + $0xa0] sm:$0xff]   ;;  %v1144_v23 = vld [vmem:[%s1578_s2 + $0xa8] sm:$0xff]  }
   0x9   :  { %1038 = vmatpush3.bf16.msra.mxu1 %v1128_v7  ;;  %1017 = vmatprep.subr.bf16.mxu0 %v1129_v8  ;;  %v1145_v24 = vld [vmem:[%s1578_s2 + $0x70] sm:$0xff]   ;;  %v1149_v28 = vld [vmem:[%s1578_s2 + $0x78] sm:$0xff]   ;;  %v43_v32 = vld [vmem:[%s1576_s0 + $0x8] sm:$0xff] }
   0xa   :  { %1039 = vmatprep.subr.bf16.mxu1 %v1130_v9  ;;  %v1146_v25 = vld [vmem:[%s1578_s2 + $0xf0] sm:$0xff]   ;;  %v1150_v29 = vld [vmem:[%s1578_s2 + $0xf8] sm:$0xff]   ;;  %v42_v34 = vld [vmem:[%s1576_s0] sm:$0xff]  ;;  %v47_v35 = vpack.c.bf16 %v43_v32, %v43_v32 }
   0xb   :  { %v1147_v26 = vld [vmem:[%s1578_s2 + $0x30] sm:$0xff]   ;;  %v1151_v30 = vld [vmem:[%s1578_s2 + $0x38] sm:$0xff]   ;;  %v46_v37 = vpack.c.bf16 %v42_v34, %v42_v34  ;;  %v1153_v41 = vld [vmem:[%s1580_s4] sm:$0xff]  }
   0xc   :  { %1018 = vmatpush3.bf16.msra.mxu0 %v1131_v10  ;;  %v1148_v27 = vld [vmem:[%s1578_s2 + $0xb0] sm:$0xff]   ;;  %v1152_v31 = vld [vmem:[%s1578_s2 + $0xb8] sm:$0xff]   ;;  %345 = vmatprep.mubr.bf16.mxu0 %v47_v35 }
   0xd   :  { %1040 = vmatpush3.bf16.msra.mxu1 %v1132_v11  ;;  %1019 = vmatprep.subr.bf16.mxu0 %v1133_v12  ;;  %v45_v33 = vld [vmem:[%s1576_s0 + $0x18] sm:$0xff]  ;;  %v44_v38 = vld [vmem:[%s1576_s0 + $0x10] sm:$0xff] }
   0xe   :  { %1041 = vmatprep.subr.bf16.mxu1 %v1134_v13  ;;  %v49_v36 = vpack.c.bf16 %v45_v33, %v45_v33  ;;  %v1417_v40 = vpack.c.bf16 %v44_v38, %v44_v38 }
  0x10   :  { %1020 = vmatpush3.bf16.msra.mxu0 %v1135_v14  ;;  %385 = vmatprep.mubr.bf16.mxu1 %v49_v36 }
  0x11   :  { %1042 = vmatpush3.bf16.msra.mxu1 %v1136_v15  ;;  %1021 = vmatprep.subr.bf16.mxu0 %v1137_v16 }
  0x12   :  { %1043 = vmatprep.subr.bf16.mxu1 %v1138_v17 }
  0x14   :  { %1022 = vmatpush3.bf16.msra.mxu0 %v1139_v18 }
  0x15   :  { %1044 = vmatpush3.bf16.msra.mxu1 %v1140_v19  ;;  %1023 = vmatprep.subr.bf16.mxu0 %v1141_v20 }
  0x16   :  { %1045 = vmatprep.subr.bf16.mxu1 %v1142_v21 }
  0x18   :  { %1024 = vmatpush3.bf16.msra.mxu0 %v1143_v22 }
  0x19   :  { %1046 = vmatpush3.bf16.msra.mxu1 %v1144_v23  ;;  %1025 = vmatprep.subr.bf16.mxu0 %v1145_v24 }
  0x1a   :  { %1047 = vmatprep.subr.bf16.mxu1 %v1146_v25 }
  0x1c   :  { %1026 = vmatpush3.bf16.msra.mxu0 %v1147_v26 }
  0x1d   :  { %1048 = vmatpush3.bf16.msra.mxu1 %v1148_v27  ;;  %1027 = vmatprep.subr.bf16.mxu0 %v1149_v28 }
  0x1e   :  { %1049 = vmatprep.subr.bf16.mxu1 %v1150_v29 }
  0x20   :  { %1028 = vmatpush3.bf16.msra.mxu0 %v1151_v30 }
  0x21   :  { %1050 = vmatpush3.bf16.msra.mxu1 %v1152_v31  ;;  %1090 = vmatprep.subr.bf16.mxu0 %v1239_v39 }
  0x23   :  { %346 = vmatmul.mubr.bf16.vlgmr.msra.gmra.mrb[0].mxu0 %v46_v37 }
  0x24   :  { %386 = vmatmul.mubr.bf16.vlgmr.msra.gmra.mrb[0].mxu1 %v1417_v40  ;;  %1091 = vmatpush3.bf16.msra.mxu0 %v1153_v41 }
  0x25   :  { %683 = vmatprep.mubr.bf16.mxu1 %v49_v36  ;;  %1092 = vmatprep.subr.bf16.mxu0 %v1239_v39 }
  0x26   :  { %18 = vsyncpa [#allocation3], 0  ;;  %v1154_v42 = vld [vmem:[%s1580_s4 + $0x8] sm:$0xff]   ;;  %v1155_v43 = vld [vmem:[%s1580_s4 + $0x10] sm:$0xff]   ;;  %vm1240_vm0 = vmmov 0   ;;  %vm695_vm2 = vcmask 1043456  }
  0x27   :  { %v1156_v44 = vld [vmem:[%s1580_s4 + $0x18] sm:$0xff]   ;;  %v1157_v45 = vld [vmem:[%s1580_s4 + $0x20] sm:$0xff]   ;;  %v1158_v46 = vld [vmem:[%s1580_s4 + $0x28] sm:$0xff]   ;;  %1106 = vmatprep.mubr.msk.bf16.mxu0 %vm1240_vm0, %v1239_v39  ;;  %vm915_vm3 = vcmask 130048   ;;  %vm691_vm4 = vcmask 64512  }
  0x28   :  { %1093 = vmatpush3.bf16.msra.mxu0 %v1154_v42  ;;  %v1159_v47 = vld [vmem:[%s1580_s4 + $0x30] sm:$0xff]   ;;  %v1160_v48 = vld [vmem:[%s1580_s4 + $0x38] sm:$0xff]   ;;  %v935_v51 = vld [vmem:[%s1579_s3] ss:$0 sm:$0xff] }
  0x29   :  { %1094 = vmatprep.subr.bf16.mxu0 %v1239_v39  ;;  %v1161_v4 = vld [vmem:[%s1583_s7 + $0x40] sm:$0xff]   ;;  %v1163_v6 = vld [vmem:[%s1583_s7 + $0x48] sm:$0xff]   ;;  %v1165_v8 = vld [vmem:[%s1583_s7 + $0x50] sm:$0xff]  }
  0x2a   :  { %v1162_v5 = vld [vmem:[%s1583_s7] sm:$0xff]   ;;  %1066 = vmatprep.subr.bf16.mxu1 %v1161_v4  ;;  %v1164_v7 = vld [vmem:[%s1583_s7 + $0x8] sm:$0xff]   ;;  %v1166_v11 = vld [vmem:[%s1583_s7 + $0x10] sm:$0xff]  }
  0x2b   :  { %1067 = vmatpush3.bf16.msra.mxu1 %v1162_v5  ;;  %v522_v9 = vld [vmem:[%s1582_s6] sm:$0xf]  ;;  %v1167_v12 = vld [vmem:[%s1583_s7 + $0x58] sm:$0xff]   ;;  %v1171_v16 = vld [vmem:[%s1583_s7 + $0x68] sm:$0xff]  }
  0x2c   :  { %1095 = vmatpush3.bf16.msra.mxu0 %v1155_v43  ;;  %1068 = vmatprep.subr.bf16.mxu1 %v1163_v6  ;;  %v697_v10 = vsel %vm695_vm2, %v522_v9, 0  ;;  %v1168_v13 = vld [vmem:[%s1583_s7 + $0x18] sm:$0xff]   ;;  %v1169_v14 = vld [vmem:[%s1583_s7 + $0x60] sm:$0xff]   ;;  %v1172_v17 = vld [vmem:[%s1583_s7 + $0x28] sm:$0xff]  }
  0x2d   :  { %1096 = vmatprep.subr.bf16.mxu0 %v1239_v39  ;;  %v1170_v15 = vld [vmem:[%s1583_s7 + $0x20] sm:$0xff]   ;;  %v1173_v18 = vld [vmem:[%s1583_s7 + $0x70] sm:$0xff]   ;;  %v1175_v20 = vld [vmem:[%s1583_s7 + $0x78] sm:$0xff]  }
  0x2e   :  { %v1174_v19 = vld [vmem:[%s1583_s7 + $0x30] sm:$0xff]   ;;  %v1176_v21 = vld [vmem:[%s1583_s7 + $0x38] sm:$0xff]   ;;  %v969_v22 = vld [vmem:[%s1581_s5] ss:$0 sm:$0xff] }
  0x2f   :  { %1069 = vmatpush3.bf16.msra.mxu1 %v1164_v7  ;;  %v1177_v30 = vld [vmem:[%s1585_s9] ss:$8 sps:$4 sm:$0xff]   ;;  %v1179_v31 = vld [vmem:[%s1585_s9 + $0x4] ss:$8 sps:$4 sm:$0xff]   ;;  %v1182_v32 = vld [vmem:[%s1585_s9 + $0x14] ss:$8 sps:$4 sm:$0xff]   ;;  %v772_v7 = vlaneseq }
  0x30   :  { %1097 = vmatpush3.bf16.msra.mxu0 %v1156_v44  ;;  %1070 = vmatprep.subr.bf16.mxu1 %v1165_v8  ;;  %v1180_v33 = vld [vmem:[%s1585_s9 + $0x10] ss:$8 sps:$4 sm:$0xff]   ;;  %v514_v35 = vld [vmem:[%s1577_s1] sm:$0xff] }
  0x31   :  { %1098 = vmatprep.subr.bf16.mxu0 %v1239_v39  ;;  %v773_v8 = vshrl.u32 %v772_v7, 7 }
  0x33   :  { %1071 = vmatpush3.bf16.msra.mxu1 %v1166_v11  ;;  %v774_v9 = vsub.s32 0, %v773_v8  ;;  %v778_v11 = vsub.s32 1, %v773_v8 }
  0x34   :  { %1099 = vmatpush3.bf16.msra.mxu0 %v1157_v45  ;;  %1072 = vmatprep.subr.bf16.mxu1 %v1167_v12  ;;  %v1185_v45 = vld [vmem:[%s1585_s9 + $0x24] ss:$8 sps:$4 sm:$0xff]  }
  0x35   :  { %1100 = vmatprep.subr.bf16.mxu0 %v1239_v39 }
  0x37   :  { %1073 = vmatpush3.bf16.msra.mxu1 %v1168_v13 }
  0x38   :  { %1101 = vmatpush3.bf16.msra.mxu0 %v1158_v46  ;;  %1074 = vmatprep.subr.bf16.mxu1 %v1169_v14  ;;  %v1183_v46 = vld [vmem:[%s1585_s9 + $0x20] ss:$8 sps:$4 sm:$0xff]  }
  0x39   :  { %1102 = vmatprep.subr.bf16.mxu0 %v1239_v39 }
  0x3b   :  { %1075 = vmatpush3.bf16.msra.mxu1 %v1170_v15 }
  0x3c   :  { %1103 = vmatpush3.bf16.msra.mxu0 %v1159_v47  ;;  %1076 = vmatprep.subr.bf16.mxu1 %v1171_v16  ;;  %v1188_v47 = vld [vmem:[%s1585_s9 + $0x34] ss:$8 sps:$4 sm:$0xff]  }
  0x3d   :  { %1104 = vmatprep.subr.bf16.mxu0 %v1239_v39 }
  0x3f   :  { %1077 = vmatpush3.bf16.msra.mxu1 %v1172_v17 }
  0x40   :  { %1105 = vmatpush3.bf16.msra.mxu0 %v1160_v48  ;;  %1078 = vmatprep.subr.bf16.mxu1 %v1173_v18  ;;  %v1186_v48 = vld [vmem:[%s1585_s9 + $0x30] ss:$8 sps:$4 sm:$0xff]  }
  0x41   :  { %1110 = vmatprep.subr.bf16.mxu0 %v1239_v39 }
  0x43   :  { %1079 = vmatpush3.bf16.msra.mxu1 %v1174_v19 }
  0x44   :  { %1080 = vmatprep.subr.bf16.mxu1 %v1175_v20 }
  0x47   :  { %1081 = vmatpush3.bf16.msra.mxu1 %v1176_v21 }
  0x48   :  { %862 = vmatprep.subr.bf16.mxu1 %v1179_v31 }
  0x4a   :  { %684 = vmatmul.mubr.bf16.vlgmr.msra.gmra.mrb[4].mxu1 %v1417_v40 }
  0x4b   :  { %863 = vmatpush1.bf16.msra.mxu1 %v1177_v30 }
  0x4c   :  { %864 = vmatprep.subr.bf16.mxu1 %v1182_v32 }
  0x4f   :  { %865 = vmatpush1.bf16.msra.mxu1 %v1180_v33 }
  0x50   :  { %866 = vmatprep.subr.bf16.mxu1 %v1185_v45 }
  0x53   :  { %867 = vmatpush1.bf16.msra.mxu1 %v1183_v46 }
  0x54   :  { %868 = vmatprep.subr.bf16.mxu1 %v1188_v47 }
  0x57   :  { %869 = vmatpush1.bf16.msra.mxu1 %v1186_v48 }
  0xf6   :  { %v1029_v49 = vpop.f32.mrb[0].mxu0 }
  0xf7   :  { %v1051_v50 = vpop.f32.mrb[0].mxu1  ;;  %v1030_v52 = vpop.f32.mrb[1].mxu0 }
  0xf8   :  { %v1052_v53 = vpop.f32.mrb[1].mxu1  ;;  %v1031_v54 = vadd.f32 %v1030_v52, %v1029_v49  ;;  %v1032_v56 = vpop.f32.mrb[2].mxu0  ;;  %v1191_v49 = vld [vmem:[%s1585_s9 + $0x44] ss:$8 sps:$4 sm:$0xff]   ;;  %v1192_v52 = vld [vmem:[%s1585_s9 + $0x50] ss:$8 sps:$4 sm:$0xff]  }
  0xf9   :  { %v1053_v55 = vadd.f32 %v1052_v53, %v1051_v50  ;;  %v1054_v57 = vpop.f32.mrb[2].mxu1  ;;  %v1033_v58 = vpop.f32.mrb[3].mxu0  ;;  %v1189_v50 = vld [vmem:[%s1585_s9 + $0x40] ss:$8 sps:$4 sm:$0xff]   ;;  %870 = vmatprep.subr.bf16.mxu1 %v1191_v49  ;;  %v1197_v53 = vld [vmem:[%s1585_s9 + $0x64] ss:$8 sps:$4 sm:$0xff]  }
  0xfa   :  { %v1055_v59 = vpop.f32.mrb[3].mxu1  ;;  %v348_v60 = vadd.f32 %v1031_v54, %v935_v51  ;;  %871 = vmatpush1.bf16.msra.mxu1 %v1189_v50  ;;  %v1194_v51 = vld [vmem:[%s1585_s9 + $0x54] ss:$8 sps:$4 sm:$0xff]   ;;  %v1195_v54 = vld [vmem:[%s1585_s9 + $0x60] ss:$8 sps:$4 sm:$0xff]   ;;  %v1242_v57 = vmov 0  }
  0xfb   :  { %872 = vmatprep.subr.bf16.mxu1 %v1194_v51  ;;  %v1198_v56 = vld [vmem:[%s1585_s9 + $0x70] ss:$8 sps:$4 sm:$0xff]   ;;  %894 = vmatprep.mubr.bf16.mxu1 %v1242_v57  ;;  %v995_v59 = vld [vmem:[%s1584_s8] ss:$0 sm:$0xff]  ;;  %s1243_s8 = smov [#allocation2]  }
  0xfc   :  { %v388_v61 = vadd.f32 %v1053_v55, %v348_v60  ;;  %v1200_v55 = vld [vmem:[%s1585_s9 + $0x74] ss:$8 sps:$4 sm:$0xff]  }
  0xfe   :  { %v394_v62 = vmin.f32 %v388_v61, 0.0  ;;  %vm393_vm1 = vcmp.gt.f32.partialorder %v388_v61, 0.0  ;;  %873 = vmatpush1.bf16.msra.mxu1 %v1192_v52 }
  0xff   :  { %874 = vmatprep.subr.bf16.mxu1 %v1197_v53 }
 0x100   :  { %v395_v63 = vmul.f32 1.442695, %v394_v62 }
 0x102   :  { %1201 = vpow2.f32 %v395_v63  ;;  %875 = vmatpush1.bf16.msra.mxu1 %v1195_v54 }
 0x103   :  { %876 = vmatprep.subr.bf16.mxu1 %v1200_v55 }
 0x106   :  { %877 = vmatpush1.bf16.msra.mxu1 %v1198_v56 }
 0x10c   :  { %v1202_v0 = vpop.eup %1201 }
 0x10d   :  { %v968_v1 = vadd.f32 -1.0, %v1202_v0 }
 0x10f   :  { %v398_v2 = vsel %vm393_vm1, %v388_v61, %v968_v1 }
 0x110   :  { %v399_v3 = vpack.c.bf16 %v398_v2, %v398_v2 }
 0x112   :  { %1107 = vmatmul.mubr.bf16.vlgmr.msra.gmra.mrb[4].mxu0 %v399_v3 }
 0x113   :  { %1112 = vmatprep.mubr.msk.bf16.mxu0 %vm1240_vm0, %v1239_v39  ;;  %1111 = vmatpush3.bf16.msra.mxu0 %v697_v10  ;;  %v770_v10 = vld [vmem:[%s1586_s10] sm:$0x3]  ;;  %s923_s10 = sshll.u32 %s1243_s8, 4  ;;  %s924_s10 = int_to_ptr.vmem [resolvable:$true] %s923_s10 }
 0x114   :  { %v775_v12 = vrot.slane %v770_v10, %v774_v9  ;;  %v779_v13 = vrot.slane %v770_v10, %v778_v11  ;;  %s1215_s3 = scalar_lea.vmem %s924_s10, 256  ;;  %p1220_p1 = scmp.lt.s32.totalorder %s924_s10, %s924_s10 }
 0x115   :  { %p1216_p0 = scmp.ne.s32.totalorder %s924_s10, %s1215_s3  ;;  %p1221_p2 = scmp.lt.s32.totalorder %s1215_s3, %s1215_s3 }
 0x117   :  { %p1222_p3 = por %p1221_p2, %p1220_p1 }
 0x119   :  { %p1223_p4 = pnand %p1222_p3, %p1216_p0 }
 0x11d   :  { %v1082_v39 = vpop.f32.mrb[4].mxu1 }
 0x11e   :  { %v1083_v40 = vpop.f32.mrb[5].mxu1 }
 0x11f   :  { %v1084_v42 = vadd.f32 %v1083_v40, %v1082_v39  ;;  %v1085_v43 = vpop.f32.mrb[6].mxu1 }
 0x120   :  { %v1086_v44 = vpop.f32.mrb[7].mxu1 }
 0x1e5   :  { %v505_v23 = vpop.f32.mrb[4].mxu0 }
 0x1e6   :  { %v506_v24 = vadd.f32 %v969_v22, %v505_v23  ;;  %v1108_v25 = vpop.f32.mrb[5].mxu0 }
 0x1e7   :  { %v508_v26 = vpop.f32.mrb[6].mxu0 }
 0x1e8   :  { %v511_v27 = vmul.f32 0.5, %v506_v24  ;;  %916 = vst.msk [vmem:[%s1588_s12] sm:$0xff] %vm915_vm3, %v506_v24  ;;  %v1109_v28 = vpop.f32.mrb[7].mxu0  ;;  %s1241_s12 = smov 120  }
 0x1ea   :  { %v512_v29 = vmul.f32 1.442695, %v511_v27 }
 0x1ec   :  { %1203 = vpow2.f32 %v512_v29 }
 0x1f6   :  { %v1204_v34 = vpop.eup %1203 }
 0x1f7   :  { %516 = vrot.lane.b32.xlu0 %v1204_v34, %s1241_s12 }
 0x269   :  { %v517_v36 = vpop.permute.xlu0 %516 }
 0x26a   :  { %v519_v37 = vmul.f32 %v517_v36, %v514_v35 }
 0x26c   :  { %v520_v38 = vadd.f32 %v519_v37, %v506_v24 }
 0x26e   :  { %v521_v41 = vpack.c.bf16 %v520_v38, %v520_v38 }
 0x270   :  { %1113 = vmatmul.mubr.msk.bf16.vlgmr.msra.gmra.mrb[8].mxu0 %vm691_vm4, %v521_v41 }
 0x343   :  { %v733_v58 = vpop.f32.mrb[8].mxu0 }
 0x344   :  { %v734_v60 = vadd.f32 %v1084_v42, %v733_v58  ;;  %v1114_v61 = vpop.f32.mrb[9].mxu0 }
 0x345   :  { %v736_v62 = vpop.f32.mrb[10].mxu0 }
 0x346   :  { %v746_v63 = vadd.f32 %v995_v59, %v734_v60  ;;  %v1115_v0 = vpop.f32.mrb[11].mxu0 }
 0x348   :  { %v748_v1 = vmin.f32 %v746_v63, 0.0  ;;  %vm747_vm5 = vcmp.gt.f32.partialorder %v746_v63, 0.0 }
 0x34a   :  { %v749_v2 = vmul.f32 1.442695, %v748_v1 }
 0x34c   :  { %1205 = vpow2.f32 %v749_v2 }
 0x356   :  { %v1206_v3 = vpop.eup %1205 }
 0x357   :  { %v996_v4 = vadd.f32 -1.0, %v1206_v3 }
 0x359   :  { %v752_v5 = vsel %vm747_vm5, %v746_v63, %v996_v4 }
 0x35a   :  { %v753_v6 = vpack.c.bf16 %v752_v5, %v752_v5 }
 0x35c   :  { %895 = vmatmul.mubr.bf16.vlgmr.msra.gmra.mrb[8].mxu1 %v753_v6 }
 0x42f   :  { %v896_v14 = vpop.f32.mrb[8].mxu1 }
 0x430   :  { %v897_v15 = vadd.f32 %v896_v14, %v775_v12  ;;  %v898_v16 = vpop.f32.mrb[9].mxu1 }
 0x431   :  { %v899_v17 = vadd.f32 %v898_v16, %v779_v13  ;;  %v900_v18 = vpop.f32.mrb[10].mxu1 }
 0x432   :  { %v903_v19 = vsub.f32 0.0, %v897_v15  ;;  %v901_v20 = vpop.f32.mrb[11].mxu1 }
 0x433   :  { %v904_v21 = vsub.f32 0.0, %v899_v17 }
 0x434   :  { %v905_v22 = vmul.f32 1.442695, %v903_v19 }
 0x435   :  { %v907_v23 = vmul.f32 1.442695, %v904_v21 }
 0x436   :  { %1207 = vpow2.f32 %v905_v22 }
 0x437   :  { %1209 = vpow2.f32 %v907_v23 }
 0x440   :  { %v1208_v24 = vpop.eup %1207 }
 0x441   :  { %v1210_v25 = vpop.eup %1209  ;;  %v909_v26 = vadd.f32 1.0, %v1208_v24 }
 0x442   :  { %v910_v27 = vadd.f32 1.0, %v1210_v25 }
 0x443   :  { %1211 = vrcp.f32 %v909_v26 }
 0x444   :  { %1213 = vrcp.f32 %v910_v27 }
 0x44d   :  { %v1212_v28 = vpop.eup %1211 }
 0x44e   :  { %v1214_v29 = vpop.eup %1213  ;;  %913 = vst [vmem:[#allocation2] sm:$0xff] %v1212_v28 }
 0x44f   :  { %914 = vst [vmem:[#allocation2 + $0x8] sm:$0xff] %v1214_v29 }
 0x450   :  { %1226 = shalt.err (!%p1223_p4)
}
 0x451   :  { %s1227_s20 = scalar_lea.hbm %s1587_s11, 256 }
 0x452   :  { %p1228_p5 = scmp.ne.s32.totalorder %s1587_s11, %s1227_s20  ;;  %p1231_p6 = scmp.lt.u32.totalorder %s1227_s20, %s1587_s11 }
 0x454   :  { %p1233_p7 = pnand %p1231_p6, %p1228_p5 }
 0x456   :  { %1236 = shalt.err (!%p1233_p7)
}
 0x457   :  { %926 = dma.vmem_to_hbm [thread:$0]  %s924_s10, 256, %s1587_s11, [#allocation3]  }
 0x458   :  { %1237 = dma.done.wait [#allocation3], 256  }
 0x459   :  { %1238 = vsyncadd [#allocation3], 4294967040 }
 0x45a   :  { %934 = vsyncpa [#allocation3], 1 }

</bundles_post_ra>
